<compile_context>
chip_gen: v7x
topology: tpu7x:2x2x1
jax: 0.10.0
libtpu: 0.0.40
codegen_flags: <defaults>
</compile_context>

<pallas_src>
import jax
import jax.numpy as jnp
from jax.experimental import pallas as pl
from jax.experimental.pallas import tpu as pltpu

HIDDEN = 100
_TILE_CAP = 8192  # max batch columns per grid step (VMEM-bounded)


def _round_up(x, m):
    return ((x + m - 1) // m) * m


def _pick_tile(n_round):
    """Pick the batch tile (multiple of 128).

    Keeps >=2 grid steps when the batch allows it (v7x megacore), caps the
    tile for VMEM, and bounds padding waste to <128 columns per step by
    rounding the per-step tile instead of the full batch.
    """
    if n_round <= 128:
        return 128
    steps = max(2, -(-n_round // _TILE_CAP))          # ceil-div, >=2 steps
    return _round_up(-(-n_round // steps), 128)


def _mlp_kernel(s_ref, a_ref, w1s_ref, w1a_ref, b1_ref, w2_ref, b2_ref,
                w3_ref, b3_ref, o_ref):
    # s_ref:(s_pad,tile_n) bf16, a_ref:(a_pad,tile_n) bf16  -- batch on lanes
    # w*_ref: bf16 weights in nn.Linear (out,in) layout, resident in VMEM
    # b*_ref: (out,1) f32 -- added to the f32 accumulator, lane-broadcast
    # Layer 1: W1 split into state/action column blocks (no wrapper concat).
    h = (jnp.dot(w1s_ref[...], s_ref[...], preferred_element_type=jnp.float32)
         + jnp.dot(w1a_ref[...], a_ref[...], preferred_element_type=jnp.float32)
         + b1_ref[...])
    h = jnp.maximum(h, 0.0).astype(jnp.bfloat16)
    h = jnp.dot(w2_ref[...], h, preferred_element_type=jnp.float32) + b2_ref[...]
    h = jnp.maximum(h, 0.0).astype(jnp.bfloat16)
    o_ref[...] = (jnp.dot(w3_ref[...], h, preferred_element_type=jnp.float32)
                  + b3_ref[...])


def init_params(key, state_dim, action_dim, hidden=HIDDEN):
    """Mimics nn.Linear default init U(-1/sqrt(fan_in), 1/sqrt(fan_in)).

    Weights are stored in nn.Linear layout (out, in), split into state/action
    column blocks for layer 1, zero-padded to MXU/VPU aligned shapes
    (hidden -> 128, small feature dims -> 16), and cast to bf16. Biases stay
    f32. Zero padding keeps the Linear+ReLU forward pass exact.
    """
    in_dim = state_dim + action_dim
    s_pad = _round_up(state_dim, 16)
    a_pad = _round_up(action_dim, 16)
    o_pad = _round_up(state_dim, 16)
    hid_pad = _round_up(hidden, 128)

    k1, k2, k3, k4, k5, k6 = jax.random.split(key, 6)

    def uinit(k, shape, fan_in):
        bound = float(fan_in) ** -0.5
        return jax.random.uniform(k, shape, jnp.float32, -bound, bound)

    w1 = uinit(k1, (hidden, in_dim), in_dim)
    b1 = uinit(k2, (hidden,), in_dim)
    w2 = uinit(k3, (hidden, hidden), hidden)
    b2 = uinit(k4, (hidden,), hidden)
    w3 = uinit(k5, (state_dim, hidden), hidden)
    b3 = uinit(k6, (state_dim,), hidden)

    w1s = jnp.zeros((hid_pad, s_pad), jnp.float32).at[:hidden, :state_dim].set(
        w1[:, :state_dim])
    w1a = jnp.zeros((hid_pad, a_pad), jnp.float32).at[:hidden, :action_dim].set(
        w1[:, state_dim:])
    w2p = jnp.zeros((hid_pad, hid_pad), jnp.float32).at[:hidden, :hidden].set(w2)
    w3p = jnp.zeros((o_pad, hid_pad), jnp.float32).at[:state_dim, :hidden].set(w3)
    b1p = jnp.zeros((hid_pad, 1), jnp.float32).at[:hidden, 0].set(b1)
    b2p = jnp.zeros((hid_pad, 1), jnp.float32).at[:hidden, 0].set(b2)
    b3p = jnp.zeros((o_pad, 1), jnp.float32).at[:state_dim, 0].set(b3)

    return dict(
        w1s=w1s.astype(jnp.bfloat16), w1a=w1a.astype(jnp.bfloat16),
        w2=w2p.astype(jnp.bfloat16), w3=w3p.astype(jnp.bfloat16),
        b1=b1p, b2=b2p, b3=b3p,
        state_dim=state_dim, action_dim=action_dim,
    )


def absolute_dynamics_forward(state, action, params):
    """next_state = f(state, action). state: (..., state_dim), action: (..., action_dim)."""
    state = jnp.asarray(state, jnp.float32)
    action = jnp.asarray(action, jnp.float32)
    lead = state.shape[:-1]
    state_dim = params["state_dim"]
    action_dim = params["action_dim"]
    assert state.shape[-1] == state_dim and action.shape[-1] == action_dim

    hid_pad, s_pad = params["w1s"].shape
    a_pad = params["w1a"].shape[1]
    o_pad = params["w3"].shape[0]

    s2 = state.reshape(-1, state_dim)
    a2 = action.reshape(-1, action_dim)
    n = s2.shape[0]

    n_round = _round_up(max(n, 1), 128)
    tile_n = _pick_tile(n_round)
    n_pad = _round_up(n_round, tile_n)
    grid = (n_pad // tile_n,)

    # Lane-dense bf16 inputs: batch on the 128-lane (last) axis.
    st = jnp.zeros((s_pad, n_pad), jnp.bfloat16).at[:state_dim, :n].set(
        s2.T.astype(jnp.bfloat16))
    at = jnp.zeros((a_pad, n_pad), jnp.bfloat16).at[:action_dim, :n].set(
        a2.T.astype(jnp.bfloat16))

    flops = 2 * n_pad * (hid_pad * (s_pad + a_pad)
                         + hid_pad * hid_pad + hid_pad * o_pad)
    bytes_accessed = (2 * n_pad * (s_pad + a_pad)          # bf16 inputs
                      + 4 * n_pad * o_pad                   # f32 output
                      + 2 * (hid_pad * (s_pad + a_pad)
                             + hid_pad * hid_pad + o_pad * hid_pad)  # bf16 weights
                      + 4 * (2 * hid_pad + o_pad))          # f32 biases
    cost = pl.CostEstimate(flops=flops, transcendentals=0,
                           bytes_accessed=bytes_accessed)

    out_t = pl.pallas_call(
        _mlp_kernel,
        out_shape=jax.ShapeDtypeStruct((o_pad, n_pad), jnp.float32),
        grid=grid,
        in_specs=[
            pl.BlockSpec((s_pad, tile_n), lambda i: (0, i)),     # state^T tile
            pl.BlockSpec((a_pad, tile_n), lambda i: (0, i)),     # action^T tile
            pl.BlockSpec((hid_pad, s_pad), lambda i: (0, 0)),    # W1 state cols
            pl.BlockSpec((hid_pad, a_pad), lambda i: (0, 0)),    # W1 action cols
            pl.BlockSpec((hid_pad, 1), lambda i: (0, 0)),        # b1
            pl.BlockSpec((hid_pad, hid_pad), lambda i: (0, 0)),  # W2
            pl.BlockSpec((hid_pad, 1), lambda i: (0, 0)),        # b2
            pl.BlockSpec((o_pad, hid_pad), lambda i: (0, 0)),    # W3
            pl.BlockSpec((o_pad, 1), lambda i: (0, 0)),          # b3
        ],
        out_specs=pl.BlockSpec((o_pad, tile_n), lambda i: (0, i)),
        compiler_params=pltpu.CompilerParams(
            dimension_semantics=("parallel",),
            vmem_limit_bytes=48 * 1024 * 1024),
        cost_estimate=cost,
    )(st, at, params["w1s"], params["w1a"], params["b1"],
      params["w2"], params["b2"], params["w3"], params["b3"])

    # Strip feature/batch padding, restore (..., state_dim) layout.
    return out_t[:state_dim, :n].T.reshape(*lead, state_dim)


def _reference_forward(state, action, params):
    """Plain-JAX f32 reference matching the PyTorch forward semantics."""
    sd = params["state_dim"]
    ad = params["action_dim"]
    w1 = jnp.concatenate([params["w1s"][:, :sd], params["w1a"][:, :ad]],
                         axis=1).astype(jnp.float32)
    w2 = params["w2"].astype(jnp.float32)
    w3 = params["w3"][:sd].astype(jnp.float32)
    b1 = params["b1"][:, 0]
    b2 = params["b2"][:, 0]
    b3 = params["b3"][:sd, 0]
    x = jnp.concatenate([state, action], axis=-1)
    h = jnp.maximum(x @ w1.T + b1, 0.0)
    h = jnp.maximum(h @ w2.T + b2, 0.0)
    return h @ w3.T + b3


if __name__ == "__main__":
    state_dim, action_dim = 4, 4
    batch_shape = (2, 4)  # arbitrary leading dims, like PyTorch (..., dim)

    key = jax.random.PRNGKey(0)
    kp, ks, ka = jax.random.split(key, 3)
    params = init_params(kp, state_dim, action_dim)

    state = jax.random.normal(ks, batch_shape + (state_dim,), jnp.float32)
    action = jax.random.normal(ka, batch_shape + (action_dim,), jnp.float32)

    out = jax.block_until_ready(absolute_dynamics_forward(state, action, params))
    ref = _reference_forward(state, action, params)

    assert out.shape == batch_shape + (state_dim,)
    # bf16 storage / bf16-input matmuls with f32 accumulation -> relaxed tol.
    assert jnp.allclose(out, ref, atol=2e-2, rtol=2e-2), (
        float(jnp.max(jnp.abs(out - ref))))

    print("KERNEL_OK")
</pallas_src>

<mosaic_0001>
module attributes {stable_mosaic.version = 11 : i64} {
  func.func @_mlp_kernel(%arg0: i32, %arg1: memref<16x128xbf16, #tpu.memory_space<vmem>>, %arg2: memref<16x128xbf16, #tpu.memory_space<vmem>>, %arg3: memref<128x16xbf16, #tpu.memory_space<vmem>>, %arg4: memref<128x16xbf16, #tpu.memory_space<vmem>>, %arg5: memref<128x1xf32, #tpu.memory_space<vmem>>, %arg6: memref<128x128xbf16, #tpu.memory_space<vmem>>, %arg7: memref<128x1xf32, #tpu.memory_space<vmem>>, %arg8: memref<16x128xbf16, #tpu.memory_space<vmem>>, %arg9: memref<16x1xf32, #tpu.memory_space<vmem>>, %arg10: memref<16x128xf32, #tpu.memory_space<vmem>>) attributes {dimension_semantics = [#tpu.dimension_semantics<parallel>], iteration_bounds = array<i64: 1>, scalar_prefetch = 0 : i64, scratch_operands = 0 : i64, tpu.core_type = #tpu.core_type<tc>, window_params = [{transform_indices = @transform_0, window_bounds = array<i64: 16, 128>}, {transform_indices = @transform_1, window_bounds = array<i64: 16, 128>}, {pipeline_mode = #tpu.pipeline_mode<synchronous>, transform_indices = @transform_2, window_bounds = array<i64: 128, 16>}, {pipeline_mode = #tpu.pipeline_mode<synchronous>, transform_indices = @transform_3, window_bounds = array<i64: 128, 16>}, {pipeline_mode = #tpu.pipeline_mode<synchronous>, transform_indices = @transform_4, window_bounds = array<i64: 128, 1>}, {pipeline_mode = #tpu.pipeline_mode<synchronous>, transform_indices = @transform_5, window_bounds = array<i64: 128, 128>}, {pipeline_mode = #tpu.pipeline_mode<synchronous>, transform_indices = @transform_6, window_bounds = array<i64: 128, 1>}, {pipeline_mode = #tpu.pipeline_mode<synchronous>, transform_indices = @transform_7, window_bounds = array<i64: 16, 128>}, {pipeline_mode = #tpu.pipeline_mode<synchronous>, transform_indices = @transform_8, window_bounds = array<i64: 16, 1>}, {transform_indices = @transform_9, window_bounds = array<i64: 16, 128>}]} {
    %c0 = arith.constant 0 : index
    %c0_0 = arith.constant 0 : index
    %0 = vector.load %arg3[%c0, %c0_0] : memref<128x16xbf16, #tpu.memory_space<vmem>>, vector<128x16xbf16>
    %c0_1 = arith.constant 0 : index
    %c0_2 = arith.constant 0 : index
    %1 = vector.load %arg1[%c0_1, %c0_2] : memref<16x128xbf16, #tpu.memory_space<vmem>>, vector<16x128xbf16>
    %cst = arith.constant dense<0.000000e+00> : vector<128x128xf32>
    %2 = tpu.matmul %0, %1, %cst {dimension_numbers = #tpu.dot_dimension_numbers<[1], [0], [0], [1], [0, 0, 1, 1], [], []>} : vector<128x16xbf16>, vector<16x128xbf16>, vector<128x128xf32> -> vector<128x128xf32>
    %c0_3 = arith.constant 0 : index
    %c0_4 = arith.constant 0 : index
    %3 = vector.load %arg4[%c0_3, %c0_4] : memref<128x16xbf16, #tpu.memory_space<vmem>>, vector<128x16xbf16>
    %c0_5 = arith.constant 0 : index
    %c0_6 = arith.constant 0 : index
    %4 = vector.load %arg2[%c0_5, %c0_6] : memref<16x128xbf16, #tpu.memory_space<vmem>>, vector<16x128xbf16>
    %cst_7 = arith.constant dense<0.000000e+00> : vector<128x128xf32>
    %5 = tpu.matmul %3, %4, %cst_7 {dimension_numbers = #tpu.dot_dimension_numbers<[1], [0], [0], [1], [0, 0, 1, 1], [], []>} : vector<128x16xbf16>, vector<16x128xbf16>, vector<128x128xf32> -> vector<128x128xf32>
    %6 = arith.addf %2, %5 : vector<128x128xf32>
    %c0_8 = arith.constant 0 : index
    %c0_9 = arith.constant 0 : index
    %7 = vector.load %arg5[%c0_8, %c0_9] : memref<128x1xf32, #tpu.memory_space<vmem>>, vector<128x1xf32>
    %8 = vector.broadcast %7 : vector<128x1xf32> to vector<128x128xf32>
    %9 = arith.addf %6, %8 : vector<128x128xf32>
    %cst_10 = arith.constant 0.000000e+00 : f32
    %10 = vector.broadcast %cst_10 : f32 to vector<128x128xf32>
    %11 = arith.maximumf %9, %10 : vector<128x128xf32>
    %12 = arith.truncf %11 : vector<128x128xf32> to vector<128x128xbf16>
    %c0_11 = arith.constant 0 : index
    %c0_12 = arith.constant 0 : index
    %13 = vector.load %arg6[%c0_11, %c0_12] : memref<128x128xbf16, #tpu.memory_space<vmem>>, vector<128x128xbf16>
    %cst_13 = arith.constant dense<0.000000e+00> : vector<128x128xf32>
    %14 = tpu.matmul %13, %12, %cst_13 {dimension_numbers = #tpu.dot_dimension_numbers<[1], [0], [0], [1], [0, 0, 1, 1], [], []>} : vector<128x128xbf16>, vector<128x128xbf16>, vector<128x128xf32> -> vector<128x128xf32>
    %c0_14 = arith.constant 0 : index
    %c0_15 = arith.constant 0 : index
    %15 = vector.load %arg7[%c0_14, %c0_15] : memref<128x1xf32, #tpu.memory_space<vmem>>, vector<128x1xf32>
    %16 = vector.broadcast %15 : vector<128x1xf32> to vector<128x128xf32>
    %17 = arith.addf %14, %16 : vector<128x128xf32>
    %cst_16 = arith.constant 0.000000e+00 : f32
    %18 = vector.broadcast %cst_16 : f32 to vector<128x128xf32>
    %19 = arith.maximumf %17, %18 : vector<128x128xf32>
    %20 = arith.truncf %19 : vector<128x128xf32> to vector<128x128xbf16>
    %c0_17 = arith.constant 0 : index
    %c0_18 = arith.constant 0 : index
    %21 = vector.load %arg8[%c0_17, %c0_18] : memref<16x128xbf16, #tpu.memory_space<vmem>>, vector<16x128xbf16>
    %cst_19 = arith.constant dense<0.000000e+00> : vector<16x128xf32>
    %22 = tpu.matmul %21, %20, %cst_19 {dimension_numbers = #tpu.dot_dimension_numbers<[1], [0], [0], [1], [0, 0, 1, 1], [], []>} : vector<16x128xbf16>, vector<128x128xbf16>, vector<16x128xf32> -> vector<16x128xf32>
    %c0_20 = arith.constant 0 : index
    %c0_21 = arith.constant 0 : index
    %23 = vector.load %arg9[%c0_20, %c0_21] : memref<16x1xf32, #tpu.memory_space<vmem>>, vector<16x1xf32>
    %24 = vector.broadcast %23 : vector<16x1xf32> to vector<16x128xf32>
    %25 = arith.addf %22, %24 : vector<16x128xf32>
    %c0_22 = arith.constant 0 : index
    %c0_23 = arith.constant 0 : index
    %26 = vector.load %arg10[%c0_22, %c0_23] : memref<16x128xf32, #tpu.memory_space<vmem>>, vector<16x128xf32>
    tpu.vector_store %arg10[%c0_22, %c0_23], %25 {strides = array<i32>} : memref<16x128xf32, #tpu.memory_space<vmem>>, vector<16x128xf32>,
    return
  }
  func.func @transform_0(%arg0: i32) -> (i32, i32) {
    %c0_i32 = arith.constant 0 : i32
    %c0_i32_0 = arith.constant 0 : i32
    return %c0_i32, %arg0 : i32, i32
  }
  func.func @transform_1(%arg0: i32) -> (i32, i32) {
    %c0_i32 = arith.constant 0 : i32
    %c0_i32_0 = arith.constant 0 : i32
    return %c0_i32, %arg0 : i32, i32
  }
  func.func @transform_2(%arg0: i32) -> (i32, i32) {
    %c0_i32 = arith.constant 0 : i32
    %c0_i32_0 = arith.constant 0 : i32
    %c0_i32_1 = arith.constant 0 : i32
    return %c0_i32, %c0_i32_0 : i32, i32
  }
  func.func @transform_3(%arg0: i32) -> (i32, i32) {
    %c0_i32 = arith.constant 0 : i32
    %c0_i32_0 = arith.constant 0 : i32
    %c0_i32_1 = arith.constant 0 : i32
    return %c0_i32, %c0_i32_0 : i32, i32
  }
  func.func @transform_4(%arg0: i32) -> (i32, i32) {
    %c0_i32 = arith.constant 0 : i32
    %c0_i32_0 = arith.constant 0 : i32
    %c0_i32_1 = arith.constant 0 : i32
    return %c0_i32, %c0_i32_0 : i32, i32
  }
  func.func @transform_5(%arg0: i32) -> (i32, i32) {
    %c0_i32 = arith.constant 0 : i32
    %c0_i32_0 = arith.constant 0 : i32
    %c0_i32_1 = arith.constant 0 : i32
    return %c0_i32, %c0_i32_0 : i32, i32
  }
  func.func @transform_6(%arg0: i32) -> (i32, i32) {
    %c0_i32 = arith.constant 0 : i32
    %c0_i32_0 = arith.constant 0 : i32
    %c0_i32_1 = arith.constant 0 : i32
    return %c0_i32, %c0_i32_0 : i32, i32
  }
  func.func @transform_7(%arg0: i32) -> (i32, i32) {
    %c0_i32 = arith.constant 0 : i32
    %c0_i32_0 = arith.constant 0 : i32
    %c0_i32_1 = arith.constant 0 : i32
    return %c0_i32, %c0_i32_0 : i32, i32
  }
  func.func @transform_8(%arg0: i32) -> (i32, i32) {
    %c0_i32 = arith.constant 0 : i32
    %c0_i32_0 = arith.constant 0 : i32
    %c0_i32_1 = arith.constant 0 : i32
    return %c0_i32, %c0_i32_0 : i32, i32
  }
  func.func @transform_9(%arg0: i32) -> (i32, i32) {
    %c0_i32 = arith.constant 0 : i32
    %c0_i32_0 = arith.constant 0 : i32
    return %c0_i32, %arg0 : i32, i32
  }
}

</mosaic_0001>

<bundles_post_ra>
// kernel: tpu_custom_call.1
= control target key start
LH: loop header
LB: loop body
LE: loop exit
PB: predicated region body
PF: predicated region fallthrough
CT: control target
= control target key end

     0   :  { %vm116_vm0 = vcmask 130048   ;;  %v1150_v3 = vmov 0   ;;  %s1426_s0 = inlined_call_operand.vmem [shape: bf16[16,128], index: 0, kind: input, shape index: {}]   ;;  %s1427_s1 = inlined_call_operand.vmem [shape: bf16[16,128], index: 1, kind: input, shape index: {}]   ;;  %s1428_s2 = inlined_call_operand.vmem [shape: bf16[128,16], index: 2, kind: input, shape index: {}]   ;;  %s1429_s3 = inlined_call_operand.vmem [shape: bf16[128,16], index: 3, kind: input, shape index: {}]   ;;  %s1430_s4 = inlined_call_operand.vmem [shape: f32[128,1], index: 4, kind: input, shape index: {}]   ;;  %s1431_s5 = inlined_call_operand.vmem [shape: bf16[128,128], index: 5, kind: input, shape index: {}]   ;;  %s1432_s6 = inlined_call_operand.vmem [shape: f32[128,1], index: 6, kind: input, shape index: {}]   ;;  %s1433_s7 = inlined_call_operand.vmem [shape: bf16[16,128], index: 7, kind: input, shape index: {}]   ;;  %s1434_s8 = inlined_call_operand.vmem [shape: f32[16,1], index: 8, kind: input, shape index: {}]   ;;  %s1435_s9 = inlined_call_operand.hbm [shape: f32[16,128], index: 9, kind: output, shape index: {}]  }
   0x1   :  { %v1099_v0 = vld [vmem:[%s1427_s1] sm:$0xff]   ;;  %v1101_v2 = vld [vmem:[%s1429_s3 + $0x8] sm:$0xff]   ;;  %1097 = vset.pattern.permute.xlu0 %v1150_v3  ;;  %v1103_v5 = vld [vmem:[%s1429_s3 + $0x10] sm:$0xff]   ;;  %1098 = vset.pattern.permute.xlu1 %v1150_v3 }
   0x2   :  { %v1100_v1 = vld [vmem:[%s1429_s3] sm:$0xff]   ;;  %987 = vmatprep.subr.bf16.mxu0 %v1099_v0  ;;  %v1104_v6 = vld [vmem:[%s1429_s3 + $0x18] sm:$0xff]   ;;  %v407_v9 = vld [vmem:[%s1430_s4 + $0x10] sm:$0xff] }
   0x3   :  { %988 = vmatpush3.bf16.msra.mxu0 %v1099_v0  ;;  %989 = vmatprep.mubr.msk.bf16.mxu0 %vm116_vm0, %v1100_v1  ;;  %v1102_v4 = vld [vmem:[%s1426_s0] sm:$0xff]   ;;  %v1106_v10 = vld [vmem:[%s1429_s3 + $0x28] sm:$0xff]   ;;  %v1107_v12 = vld [vmem:[%s1429_s3 + $0x30] sm:$0xff]  }
   0x4   :  { %1005 = vmatprep.subr.bf16.mxu0 %v1102_v4  ;;  %v1105_v7 = vld [vmem:[%s1429_s3 + $0x20] sm:$0xff]   ;;  %433 = vperm.xlu1 %1098, %v407_v9   ;;  %v406_v11 = vld [vmem:[%s1430_s4 + $0x8] sm:$0xff]  ;;  %v408_v13 = vld [vmem:[%s1430_s4 + $0x18] sm:$0xff] }
   0x5   :  { %v405_v8 = vld [vmem:[%s1430_s4] sm:$0xff]  ;;  %v410_v15 = vld [vmem:[%s1430_s4 + $0x28] sm:$0xff]  ;;  %v1108_v16 = vld [vmem:[%s1429_s3 + $0x38] sm:$0xff]  }
   0x6   :  { %990 = vmatmul.mubr.msk.bf16.vlgmr.msra.gmra.mrb[0].mxu0 %vm116_vm0, %v1101_v2  ;;  %423 = vperm.xlu0 %1097, %v405_v8   ;;  %v409_v14 = vld [vmem:[%s1430_s4 + $0x20] sm:$0xff]  ;;  %v411_v17 = vld [vmem:[%s1430_s4 + $0x30] sm:$0xff]  ;;  %v412_v18 = vld [vmem:[%s1430_s4 + $0x38] sm:$0xff] }
   0x7   :  { %1006 = vmatpush3.bf16.msra.mxu0 %v1102_v4  ;;  %993 = vmatprep.mubr.msk.bf16.mxu0 %vm116_vm0, %v1103_v5  ;;  %v1109_v19 = vld [vmem:[%s1428_s2] sm:$0xff]   ;;  %v414_v21 = vld [vmem:[%s1430_s4 + $0x48] sm:$0xff]  ;;  %v415_v23 = vld [vmem:[%s1430_s4 + $0x50] sm:$0xff] }
   0x8   :  { %438 = vperm.xlu1 %1098, %v408_v13   ;;  %v413_v20 = vld [vmem:[%s1430_s4 + $0x40] sm:$0xff]  ;;  %v1110_v22 = vld [vmem:[%s1428_s2 + $0x8] sm:$0xff]   ;;  %v416_v24 = vld [vmem:[%s1430_s4 + $0x58] sm:$0xff] }
   0x9   :  { %v1111_v25 = vld [vmem:[%s1428_s2 + $0x10] sm:$0xff]  }
   0xa   :  { %428 = vperm.xlu0 %1097, %v406_v11  }
   0xc   :  { %448 = vperm.xlu1 %1098, %v410_v15  }
   0xe   :  { %994 = vmatmul.mubr.msk.bf16.gmra.mrb[4].mxu0 %vm116_vm0, %v1104_v6  ;;  %443 = vperm.xlu0 %1097, %v409_v14  }
   0xf   :  { %997 = vmatprep.mubr.msk.bf16.mxu0 %vm116_vm0, %v1105_v7 }
  0x10   :  { %458 = vperm.xlu1 %1098, %v412_v18  }
  0x12   :  { %453 = vperm.xlu0 %1097, %v411_v17  }
  0x14   :  { %468 = vperm.xlu1 %1098, %v414_v21  }
  0x16   :  { %998 = vmatmul.mubr.msk.bf16.gmra.mrb[8].mxu0 %vm116_vm0, %v1106_v10  ;;  %463 = vperm.xlu0 %1097, %v413_v20  }
  0x17   :  { %1001 = vmatprep.mubr.msk.bf16.mxu0 %vm116_vm0, %v1107_v12 }
  0x1e   :  { %1002 = vmatmul.mubr.msk.bf16.gmra.mrb[12].mxu0 %vm116_vm0, %v1108_v16 }
  0x1f   :  { %1007 = vmatprep.mubr.msk.bf16.mxu0 %vm116_vm0, %v1109_v19 }
  0x20   :  { %14 = vsyncpa [#allocation3], 0  ;;  %473 = vperm.xlu0 %1097, %v415_v23   ;;  %478 = vperm.xlu1 %1098, %v416_v24   ;;  %v417_v26 = vld [vmem:[%s1430_s4 + $0x60] sm:$0xff]  ;;  %v418_v27 = vld [vmem:[%s1430_s4 + $0x68] sm:$0xff]  ;;  %vm1152_vm1 = vmmov 0   ;;  %s1153_s25 = smov [#allocation2]  }
  0x21   :  { %v1112_v28 = vld [vmem:[%s1428_s2 + $0x18] sm:$0xff]   ;;  %v419_v29 = vld [vmem:[%s1430_s4 + $0x70] sm:$0xff]  ;;  %v1113_v31 = vld [vmem:[%s1428_s2 + $0x20] sm:$0xff]   ;;  %s890_s26 = sshll.u32 %s1153_s25, 4  ;;  %s891_s26 = int_to_ptr.vmem [resolvable:$true] %s890_s26 }
  0x22   :  { %v420_v30 = vld [vmem:[%s1430_s4 + $0x78] sm:$0xff]  ;;  %v557_v32 = vld [vmem:[%s1432_s6] sm:$0xff]  ;;  %v558_v33 = vld [vmem:[%s1432_s6 + $0x8] sm:$0xff]  ;;  %s1126_s27 = scalar_lea.vmem %s891_s26, 256  ;;  %p1131_p1 = scmp.lt.s32.totalorder %s891_s26, %s891_s26 }
  0x23   :  { %v1114_v34 = vld [vmem:[%s1428_s2 + $0x28] sm:$0xff]   ;;  %v559_v35 = vld [vmem:[%s1432_s6 + $0x10] sm:$0xff]  ;;  %v560_v36 = vld [vmem:[%s1432_s6 + $0x18] sm:$0xff]  ;;  %p1127_p0 = scmp.ne.s32.totalorder %s891_s26, %s1126_s27  ;;  %p1132_p2 = scmp.lt.s32.totalorder %s1126_s27, %s1126_s27 }
  0x24   :  { %483 = vperm.xlu0 %1097, %v417_v26   ;;  %488 = vperm.xlu1 %1098, %v418_v27   ;;  %v1115_v37 = vld [vmem:[%s1428_s2 + $0x30] sm:$0xff]   ;;  %v561_v38 = vld [vmem:[%s1432_s6 + $0x20] sm:$0xff]  ;;  %v562_v39 = vld [vmem:[%s1432_s6 + $0x28] sm:$0xff] }
  0x25   :  { %v1116_v40 = vld [vmem:[%s1428_s2 + $0x38] sm:$0xff]   ;;  %v563_v41 = vld [vmem:[%s1432_s6 + $0x30] sm:$0xff]  ;;  %v565_v43 = vld [vmem:[%s1432_s6 + $0x40] sm:$0xff]  ;;  %p1133_p3 = por %p1132_p2, %p1131_p1 }
  0x26   :  { %1008 = vmatmul.mubr.msk.bf16.vlgmr.msra.gmra.mrb[0].mxu0 %vm116_vm0, %v1110_v22  ;;  %v564_v42 = vld [vmem:[%s1432_s6 + $0x38] sm:$0xff]  ;;  %v566_v44 = vld [vmem:[%s1432_s6 + $0x48] sm:$0xff]  ;;  %v567_v45 = vld [vmem:[%s1432_s6 + $0x50] sm:$0xff] }
  0x27   :  { %1011 = vmatprep.mubr.msk.bf16.mxu0 %vm116_vm0, %v1111_v25  ;;  %v568_v46 = vld [vmem:[%s1432_s6 + $0x58] sm:$0xff]  ;;  %v569_v47 = vld [vmem:[%s1432_s6 + $0x60] sm:$0xff]  ;;  %v570_v48 = vld [vmem:[%s1432_s6 + $0x68] sm:$0xff]  ;;  %p1134_p4 = pnand %p1133_p3, %p1127_p0 }
  0x28   :  { %493 = vperm.xlu0 %1097, %v419_v29   ;;  %498 = vperm.xlu1 %1098, %v420_v30   ;;  %v571_v49 = vld [vmem:[%s1432_s6 + $0x70] sm:$0xff]  ;;  %v572_v50 = vld [vmem:[%s1432_s6 + $0x78] sm:$0xff]  ;;  %v824_v51 = vld [vmem:[%s1434_s8] sm:$0xff] }
  0x29   :  { %v825_v52 = vld [vmem:[%s1434_s8 + $0x8] sm:$0xff]  ;;  %v1117_v53 = vld [vmem:[%s1431_s5] sm:$0xff]  }
  0x2a   :  { %1039 = vmatprep.mubr.bf16.mxu1 %v1117_v53 }
  0x2c   :  { %575 = vperm.xlu0 %1097, %v557_v32   ;;  %580 = vperm.xlu1 %1098, %v558_v33  }
  0x2e   :  { %1012 = vmatmul.mubr.msk.bf16.gmra.mrb[4].mxu0 %vm116_vm0, %v1112_v28 }
  0x2f   :  { %1015 = vmatprep.mubr.msk.bf16.mxu0 %vm116_vm0, %v1113_v31 }
  0x30   :  { %585 = vperm.xlu0 %1097, %v559_v35   ;;  %590 = vperm.xlu1 %1098, %v560_v36  }
  0x34   :  { %595 = vperm.xlu0 %1097, %v561_v38   ;;  %600 = vperm.xlu1 %1098, %v562_v39  }
  0x36   :  { %1016 = vmatmul.mubr.msk.bf16.gmra.mrb[8].mxu0 %vm116_vm0, %v1114_v34 }
  0x37   :  { %1019 = vmatprep.mubr.msk.bf16.mxu0 %vm116_vm0, %v1115_v37 }
  0x38   :  { %605 = vperm.xlu0 %1097, %v563_v41   ;;  %610 = vperm.xlu1 %1098, %v564_v42  }
  0x3c   :  { %615 = vperm.xlu0 %1097, %v565_v43   ;;  %620 = vperm.xlu1 %1098, %v566_v44  }
  0x3e   :  { %1020 = vmatmul.mubr.msk.bf16.gmra.mrb[12].mxu0 %vm116_vm0, %v1116_v40 }
  0x40   :  { %625 = vperm.xlu0 %1097, %v567_v45   ;;  %630 = vperm.xlu1 %1098, %v568_v46  }
  0x44   :  { %635 = vperm.xlu0 %1097, %v569_v47   ;;  %640 = vperm.xlu1 %1098, %v570_v48  }
  0x48   :  { %645 = vperm.xlu0 %1097, %v571_v49   ;;  %650 = vperm.xlu1 %1098, %v572_v50  }
  0x4c   :  { %828 = vperm.xlu0 %1097, %v824_v51   ;;  %833 = vperm.xlu1 %1098, %v825_v52  }
  0x83   :  { %v434_v55 = vpop.permute.xlu1 %433 }
  0x85   :  { %v424_v54 = vpop.permute.xlu0 %423 }
  0x87   :  { %v439_v57 = vpop.permute.xlu1 %438 }
  0x89   :  { %v429_v56 = vpop.permute.xlu0 %428 }
  0x8b   :  { %v449_v59 = vpop.permute.xlu1 %448 }
  0x8d   :  { %v444_v58 = vpop.permute.xlu0 %443 }
  0x8f   :  { %v459_v0 = vpop.permute.xlu1 %458 }
  0x91   :  { %v454_v60 = vpop.permute.xlu0 %453 }
  0x93   :  { %v469_v12 = vpop.permute.xlu1 %468 }
  0x95   :  { %v464_v8 = vpop.permute.xlu0 %463 }
  0x9f   :  { %v474_v21 = vpop.permute.xlu0 %473  ;;  %v479_v25 = vpop.permute.xlu1 %478 }
  0xa3   :  { %v484_v33 = vpop.permute.xlu0 %483  ;;  %v489_v38 = vpop.permute.xlu1 %488 }
  0xa7   :  { %v494_v45 = vpop.permute.xlu0 %493  ;;  %v499_v50 = vpop.permute.xlu1 %498 }
  0xf9   :  { %v1009_v61 = vpop.f32.mrb[0].mxu0 }
  0xfa   :  { %v503_v62 = vadd.f32 %v1009_v61, %v434_v55  ;;  %v342_v63 = vpop.f32.mrb[1].mxu0 }
  0xfb   :  { %v501_v1 = vadd.f32 %v424_v54, %v342_v63  ;;  %v1010_v2 = vpop.f32.mrb[2].mxu0  ;;  %v1119_v63 = vld [vmem:[%s1431_s5 + $0x10] sm:$0xff]  }
  0xfc   :  { %v504_v3 = vadd.f32 %v1010_v2, %v439_v57  ;;  %v345_v4 = vpop.f32.mrb[3].mxu0  ;;  %v519_v6 = vmax.f32 %v503_v62, 0.0  ;;  %v1118_v62 = vld [vmem:[%s1431_s5 + $0x8] sm:$0xff]  }
  0xfd   :  { %v502_v5 = vadd.f32 %v429_v56, %v345_v4  ;;  %v517_v9 = vmax.f32 %v501_v1, 0.0  ;;  %v1121_v1 = vld [vmem:[%s1431_s5 + $0x20] sm:$0xff]   ;;  %v1122_v2 = vld [vmem:[%s1431_s5 + $0x28] sm:$0xff]   ;;  %v1124_v4 = vld [vmem:[%s1431_s5 + $0x38] sm:$0xff]  }
  0xfe   :  { %v520_v7 = vmax.f32 %v504_v3, 0.0  ;;  %v1123_v3 = vld [vmem:[%s1431_s5 + $0x30] sm:$0xff]  }
  0xff   :  { %v518_v10 = vmax.f32 %v502_v5, 0.0  ;;  %v1151_v5 = vmov 0.0  }
 0x100   :  { %v534_v11 = vpack.c.bf16 %v520_v7, %v519_v6  ;;  %v576_v6 = vpop.permute.xlu0 %575  ;;  %v581_v7 = vpop.permute.xlu1 %580 }
 0x101   :  { %v1013_v13 = vpop.f32.mrb[4].mxu0  ;;  %v533_v14 = vpack.c.bf16 %v518_v10, %v517_v9 }
 0x102   :  { %v507_v15 = vadd.f32 %v1013_v13, %v454_v60  ;;  %v358_v16 = vpop.f32.mrb[5].mxu0 }
 0x103   :  { %v505_v17 = vadd.f32 %v444_v58, %v358_v16  ;;  %v1014_v18 = vpop.f32.mrb[6].mxu0  ;;  %1023 = vmatprep.subr.bf16.mxu1 %v533_v14 }
 0x104   :  { %v508_v19 = vadd.f32 %v1014_v18, %v459_v0  ;;  %v361_v20 = vpop.f32.mrb[7].mxu0  ;;  %1024 = vmatpush3.bf16.msra.mxu1 %v533_v14  ;;  %v523_v23 = vmax.f32 %v507_v15, 0.0  ;;  %v1120_v0 = vld [vmem:[%s1431_s5 + $0x18] sm:$0xff]   ;;  %v591_v9 = vpop.permute.xlu1 %590 }
 0x105   :  { %v506_v22 = vadd.f32 %v449_v59, %v361_v20  ;;  %1025 = vmatprep.subr.bf16.mxu1 %v534_v11  ;;  %v521_v26 = vmax.f32 %v505_v17, 0.0 }
 0x106   :  { %v524_v24 = vmax.f32 %v508_v19, 0.0 }
 0x107   :  { %v522_v27 = vmax.f32 %v506_v22, 0.0 }
 0x108   :  { %v536_v28 = vpack.c.bf16 %v524_v24, %v523_v23  ;;  %1026 = vmatpush3.bf16.msra.mxu1 %v534_v11  ;;  %v601_v11 = vpop.permute.xlu1 %600 }
 0x109   :  { %v535_v29 = vpack.c.bf16 %v522_v27, %v521_v26  ;;  %v1017_v30 = vpop.f32.mrb[8].mxu0 }
 0x10a   :  { %v511_v31 = vadd.f32 %v1017_v30, %v474_v21  ;;  %v374_v32 = vpop.f32.mrb[9].mxu0 }
 0x10b   :  { %v509_v34 = vadd.f32 %v464_v8, %v374_v32  ;;  %v1018_v35 = vpop.f32.mrb[10].mxu0  ;;  %1027 = vmatprep.subr.bf16.mxu1 %v535_v29  ;;  %v586_v8 = vpop.permute.xlu0 %585 }
 0x10c   :  { %v512_v36 = vadd.f32 %v1018_v35, %v479_v25  ;;  %v377_v37 = vpop.f32.mrb[11].mxu0  ;;  %1028 = vmatpush3.bf16.msra.mxu1 %v535_v29  ;;  %v527_v40 = vmax.f32 %v511_v31, 0.0  ;;  %v611_v16 = vpop.permute.xlu1 %610 }
 0x10d   :  { %v510_v39 = vadd.f32 %v469_v12, %v377_v37  ;;  %1029 = vmatprep.subr.bf16.mxu1 %v536_v28  ;;  %v525_v42 = vmax.f32 %v509_v34, 0.0 }
 0x10e   :  { %v528_v41 = vmax.f32 %v512_v36, 0.0 }
 0x10f   :  { %v526_v43 = vmax.f32 %v510_v39, 0.0  ;;  %v596_v10 = vpop.permute.xlu0 %595 }
 0x110   :  { %v538_v44 = vpack.c.bf16 %v528_v41, %v527_v40  ;;  %1030 = vmatpush3.bf16.msra.mxu1 %v536_v28  ;;  %v621_v28 = vpop.permute.xlu1 %620 }
 0x111   :  { %v537_v46 = vpack.c.bf16 %v526_v43, %v525_v42  ;;  %v1021_v47 = vpop.f32.mrb[12].mxu0 }
 0x112   :  { %v515_v48 = vadd.f32 %v1021_v47, %v494_v45  ;;  %v390_v49 = vpop.f32.mrb[13].mxu0 }
 0x113   :  { %v513_v51 = vadd.f32 %v484_v33, %v390_v49  ;;  %v1022_v52 = vpop.f32.mrb[14].mxu0  ;;  %1031 = vmatprep.subr.bf16.mxu1 %v537_v46  ;;  %v606_v12 = vpop.permute.xlu0 %605 }
 0x114   :  { %v516_v53 = vadd.f32 %v1022_v52, %v499_v50  ;;  %v393_v54 = vpop.f32.mrb[15].mxu0  ;;  %1032 = vmatpush3.bf16.msra.mxu1 %v537_v46  ;;  %v531_v56 = vmax.f32 %v515_v48, 0.0  ;;  %v631_v41 = vpop.permute.xlu1 %630 }
 0x115   :  { %v514_v55 = vadd.f32 %v489_v38, %v393_v54  ;;  %1033 = vmatprep.subr.bf16.mxu1 %v538_v44  ;;  %v529_v58 = vmax.f32 %v513_v51, 0.0 }
 0x116   :  { %v532_v57 = vmax.f32 %v516_v53, 0.0 }
 0x117   :  { %v530_v59 = vmax.f32 %v514_v55, 0.0  ;;  %v616_v24 = vpop.permute.xlu0 %615 }
 0x118   :  { %v540_v60 = vpack.c.bf16 %v532_v57, %v531_v56  ;;  %1034 = vmatpush3.bf16.msra.mxu1 %v538_v44  ;;  %v641_v54 = vpop.permute.xlu1 %640 }
 0x119   :  { %v539_v61 = vpack.c.bf16 %v530_v59, %v529_v58 }
 0x11b   :  { %1035 = vmatprep.subr.bf16.mxu1 %v539_v61  ;;  %v626_v37 = vpop.permute.xlu0 %625 }
 0x11c   :  { %1036 = vmatpush3.bf16.msra.mxu1 %v539_v61 }
 0x11d   :  { %1037 = vmatprep.subr.bf16.mxu1 %v540_v60 }
 0x11f   :  { %v636_v49 = vpop.permute.xlu0 %635 }
 0x120   :  { %1038 = vmatpush3.bf16.msra.mxu1 %v540_v60 }
 0x121   :  { %1055 = vmatprep.subr.bf16.mxu1 %v1151_v5 }
 0x123   :  { %1040 = vmatmul.mubr.bf16.vlgmr.msra.gmra.mrb[0].mxu1 %v1118_v62  ;;  %v646_v61 = vpop.permute.xlu0 %645 }
 0x124   :  { %1043 = vmatprep.mubr.bf16.mxu1 %v1119_v63 }
 0x12b   :  { %1044 = vmatmul.mubr.bf16.gmra.mrb[4].mxu1 %v1120_v0 }
 0x12c   :  { %1047 = vmatprep.mubr.bf16.mxu1 %v1121_v1 }
 0x133   :  { %1048 = vmatmul.mubr.bf16.gmra.mrb[8].mxu1 %v1122_v2  ;;  %v651_v2 = vpop.permute.xlu1 %650 }
 0x134   :  { %1051 = vmatprep.mubr.bf16.mxu1 %v1123_v3 }
 0x13b   :  { %1052 = vmatmul.mubr.bf16.gmra.mrb[12].mxu1 %v1124_v4 }
 0x13c   :  { %1071 = vmatprep.mubr.msk.bf16.mxu1 %vm1152_vm1, %v1151_v5 }
 0x1f6   :  { %v1041_v13 = vpop.f32.mrb[0].mxu1 }
 0x1f7   :  { %v744_v14 = vadd.f32 %v1041_v13, %v586_v8  ;;  %v735_v15 = vpop.f32.mrb[1].mxu1 }
 0x1f8   :  { %v736_v17 = vadd.f32 %v735_v15, %v576_v6  ;;  %v1042_v18 = vpop.f32.mrb[2].mxu1  ;;  %v1125_v15 = vld [vmem:[%s1433_s7] sm:$0xff]  }
 0x1f9   :  { %v747_v19 = vadd.f32 %v1042_v18, %v591_v9  ;;  %v738_v20 = vpop.f32.mrb[3].mxu1  ;;  %v800_v22 = vmax.f32 %v744_v14, 0.0 }
 0x1fa   :  { %v739_v21 = vadd.f32 %v738_v20, %v581_v7  ;;  %v798_v25 = vmax.f32 %v736_v17, 0.0  ;;  %v834_v20 = vpop.permute.xlu1 %833 }
 0x1fb   :  { %v801_v23 = vmax.f32 %v747_v19, 0.0 }
 0x1fc   :  { %v799_v26 = vmax.f32 %v739_v21, 0.0 }
 0x1fd   :  { %v815_v27 = vpack.c.bf16 %v801_v23, %v800_v22 }
 0x1fe   :  { %v814_v29 = vpack.c.bf16 %v799_v26, %v798_v25  ;;  %v1045_v30 = vpop.f32.mrb[4].mxu1 }
 0x1ff   :  { %v760_v31 = vadd.f32 %v1045_v30, %v606_v12  ;;  %v751_v32 = vpop.f32.mrb[5].mxu1 }
 0x200   :  { %v752_v33 = vadd.f32 %v751_v32, %v596_v10  ;;  %v1046_v34 = vpop.f32.mrb[6].mxu1  ;;  %1056 = vmatpush3.bf16.msra.mxu1 %v814_v29 }
 0x201   :  { %v763_v35 = vadd.f32 %v1046_v34, %v611_v16  ;;  %v754_v36 = vpop.f32.mrb[7].mxu1  ;;  %1057 = vmatprep.subr.bf16.mxu1 %v1151_v5  ;;  %v804_v39 = vmax.f32 %v760_v31, 0.0  ;;  %v829_v16 = vpop.permute.xlu0 %828 }
 0x202   :  { %v755_v38 = vadd.f32 %v754_v36, %v601_v11  ;;  %v802_v42 = vmax.f32 %v752_v33, 0.0 }
 0x203   :  { %v805_v40 = vmax.f32 %v763_v35, 0.0 }
 0x204   :  { %v803_v43 = vmax.f32 %v755_v38, 0.0  ;;  %1058 = vmatpush3.bf16.msra.mxu1 %v815_v27 }
 0x205   :  { %v817_v44 = vpack.c.bf16 %v805_v40, %v804_v39  ;;  %1059 = vmatprep.subr.bf16.mxu1 %v1151_v5 }
 0x206   :  { %v816_v45 = vpack.c.bf16 %v803_v43, %v802_v42  ;;  %v1049_v46 = vpop.f32.mrb[8].mxu1 }
 0x207   :  { %v776_v47 = vadd.f32 %v1049_v46, %v626_v37  ;;  %v767_v48 = vpop.f32.mrb[9].mxu1 }
 0x208   :  { %v768_v50 = vadd.f32 %v767_v48, %v616_v24  ;;  %v1050_v51 = vpop.f32.mrb[10].mxu1  ;;  %1060 = vmatpush3.bf16.msra.mxu1 %v816_v45 }
 0x209   :  { %v779_v52 = vadd.f32 %v1050_v51, %v631_v41  ;;  %v770_v53 = vpop.f32.mrb[11].mxu1  ;;  %1061 = vmatprep.subr.bf16.mxu1 %v1151_v5  ;;  %v808_v56 = vmax.f32 %v776_v47, 0.0 }
 0x20a   :  { %v771_v55 = vadd.f32 %v770_v53, %v621_v28  ;;  %v806_v58 = vmax.f32 %v768_v50, 0.0 }
 0x20b   :  { %v809_v57 = vmax.f32 %v779_v52, 0.0 }
 0x20c   :  { %v807_v59 = vmax.f32 %v771_v55, 0.0  ;;  %1062 = vmatpush3.bf16.msra.mxu1 %v817_v44 }
 0x20d   :  { %v819_v60 = vpack.c.bf16 %v809_v57, %v808_v56  ;;  %1063 = vmatprep.subr.bf16.mxu1 %v1151_v5 }
 0x20e   :  { %v818_v62 = vpack.c.bf16 %v807_v59, %v806_v58  ;;  %v1053_v63 = vpop.f32.mrb[12].mxu1 }
 0x20f   :  { %v792_v0 = vadd.f32 %v1053_v63, %v646_v61  ;;  %v783_v1 = vpop.f32.mrb[13].mxu1 }
 0x210   :  { %v784_v3 = vadd.f32 %v783_v1, %v636_v49  ;;  %v1054_v4 = vpop.f32.mrb[14].mxu1  ;;  %1064 = vmatpush3.bf16.msra.mxu1 %v818_v62 }
 0x211   :  { %v795_v6 = vadd.f32 %v1054_v4, %v651_v2  ;;  %v786_v7 = vpop.f32.mrb[15].mxu1  ;;  %1065 = vmatprep.subr.bf16.mxu1 %v1151_v5  ;;  %v812_v9 = vmax.f32 %v792_v0, 0.0 }
 0x212   :  { %v787_v8 = vadd.f32 %v786_v7, %v641_v54  ;;  %v810_v11 = vmax.f32 %v784_v3, 0.0 }
 0x213   :  { %v813_v10 = vmax.f32 %v795_v6, 0.0 }
 0x214   :  { %v811_v12 = vmax.f32 %v787_v8, 0.0  ;;  %1066 = vmatpush3.bf16.msra.mxu1 %v819_v60 }
 0x215   :  { %v821_v13 = vpack.c.bf16 %v813_v10, %v812_v9  ;;  %1067 = vmatprep.subr.bf16.mxu1 %v1151_v5 }
 0x216   :  { %v820_v14 = vpack.c.bf16 %v811_v12, %v810_v11 }
 0x218   :  { %1068 = vmatpush3.bf16.msra.mxu1 %v820_v14 }
 0x219   :  { %1069 = vmatprep.subr.bf16.mxu1 %v1151_v5 }
 0x21c   :  { %1070 = vmatpush3.bf16.msra.mxu1 %v821_v13 }
 0x21f   :  { %1072 = vmatmul.mubr.bf16.vlgmr.msra.gmra.mrb[16].mxu1 %v1125_v15 }
 0x2f2   :  { %v876_v17 = vpop.f32.mrb[16].mxu1 }
 0x2f3   :  { %v877_v18 = vadd.f32 %v876_v17, %v829_v16  ;;  %v1073_v19 = vpop.f32.mrb[17].mxu1 }
 0x2f4   :  { %v879_v21 = vpop.f32.mrb[18].mxu1 }
 0x2f5   :  { %883 = vst [vmem:[#allocation2] sm:$0xff] %v877_v18  ;;  %v880_v22 = vadd.f32 %v879_v21, %v834_v20  ;;  %v1074_v23 = vpop.f32.mrb[19].mxu1 }
 0x2f7   :  { %884 = vst [vmem:[#allocation2 + $0x8] sm:$0xff] %v880_v22 }
 0x2f8   :  { %1137 = shalt.err (!%p1134_p4)
}
 0x2f9   :  { %s1138_s29 = scalar_lea.hbm %s1435_s9, 256 }
 0x2fa   :  { %p1139_p5 = scmp.ne.s32.totalorder %s1435_s9, %s1138_s29  ;;  %p1142_p6 = scmp.lt.u32.totalorder %s1138_s29, %s1435_s9 }
 0x2fc   :  { %p1144_p7 = pnand %p1142_p6, %p1139_p5 }
 0x2fe   :  { %1147 = shalt.err (!%p1144_p7)
}
 0x2ff   :  { %s1154_s13 = smov 128   ;;  %s1155_s14 = smov 8  }
 0x300   :  { %896 = dma.vmem_to_hbm [thread:$0]  %s891_s26, 256, %s1435_s9, [#allocation3], %s1154_s13, %s1154_s13, %s1155_s14  }
 0x301   :  { %1148 = dma.done.wait [#allocation3], 256  }
 0x302   :  { %1149 = vsyncadd [#allocation3], 4294967040 }
 0x303   :  { %900 = vsyncpa [#allocation3], 1 }

</bundles_post_ra>
